<compile_context>
chip_gen: v6e
topology: v6e:2x2x1
jax: 0.10.0
libtpu: 0.0.40
codegen_flags: <defaults>
</compile_context>

<pallas_src>
import jax
import jax.numpy as jnp
from jax import lax
from jax.experimental import pallas as pl
from jax.experimental.pallas import tpu as pltpu

_BN_EPS = 1e-5


def _round_up(x, m):
    return ((x + m - 1) // m) * m


def _pad_dim(dim):
    # Lane-dense padding: 128 fills a vreg lane row (optimal for v5e's
    # 4x128x128 MXU and for dim <= 128); once the real feature dim exceeds
    # 128, pad to multiples of 256 to fill the 256x256 MXU of v6e/v7x.
    return _round_up(dim, 128) if dim <= 128 else _round_up(dim, 256)


def _block_fwd(x, w, gamma, beta, inv_n):
    """One generator block: Linear (no bias) -> BatchNorm1d(train) -> ReLU.

    x: (N, Dp) f32, w: (Dp, Dp) bf16, gamma/beta: (1, Dp) f32.
    BN uses a centered (two-pass) variance and is folded into a per-feature
    scale/shift; rsqrt goes to the EUP slot."""
    y = jnp.dot(x.astype(w.dtype), w, preferred_element_type=jnp.float32)
    mean = jnp.sum(y, axis=0, keepdims=True) * inv_n          # (1, Dp)
    c = y - mean                                              # centered
    var = jnp.sum(c * c, axis=0, keepdims=True) * inv_n       # biased var
    scale = gamma * lax.rsqrt(var + _BN_EPS)                  # (1, Dp)
    return jnp.maximum(c * scale + beta, 0.0)


def _generator_kernel_fused(x_ref, w_ref, gamma_ref, beta_ref, o_ref):
    """Whole generator in one kernel invocation (no grid): all layer weights
    are VMEM-resident and the layer loop is fully unrolled."""
    n_layers = w_ref.shape[0]
    inv_n = 1.0 / x_ref.shape[0]

    def residual_body(i, h):
        return h + _block_fwd(h, w_ref[i], gamma_ref[i], beta_ref[i], inv_n)

    h = x_ref[...]
    # Residual blocks, fully unrolled (static trip count).
    h = lax.fori_loop(0, n_layers - 1, residual_body, h, unroll=True)
    # Tail block: Linear -> BN -> ReLU, no residual (static control flow).
    last = n_layers - 1
    o_ref[...] = _block_fwd(h, w_ref[last], gamma_ref[last], beta_ref[last],
                            inv_n)


def _generator_kernel_streamed(x_ref, w_ref, gamma_ref, beta_ref, o_ref):
    """Fallback for weight stacks too large to hold in VMEM at once.
    One grid step == one generator block; the activation lives in the
    VMEM-resident output block (constant out index_map) across the grid."""
    l = pl.program_id(0)
    n_layers = pl.num_programs(0)
    inv_n = 1.0 / x_ref.shape[0]

    # Seed the resident activation with the padded input on the first layer.
    @pl.when(l == 0)
    def _():
        o_ref[...] = x_ref[...]

    x = o_ref[...]
    z = _block_fwd(x, w_ref[...], gamma_ref[...], beta_ref[...], inv_n)

    @pl.when(l + 1 < n_layers)          # residual blocks
    def _():
        o_ref[...] = x + z

    @pl.when(l + 1 == n_layers)         # tail block (no residual)
    def _():
        o_ref[...] = z


def generator_forward(x, params, *, fused_weight_bytes_limit=8 * 1024 * 1024):
    """x: (N, D) float32.  params: (W, gamma, beta) stacked over layers with
      W:     (L, Dp, Dp) bf16   pre-transposed (in, out), zero-padded
      gamma: (L, 1, Dp)  f32    zero-padded
      beta:  (L, 1, Dp)  f32    zero-padded
    Returns (N, D) float32."""
    w, gamma, beta = params
    n_layers, dp, _ = w.shape
    n, d = x.shape

    # Zero-pad features to the lane-dense width Dp (padded lanes stay exactly
    # 0 through every block because gamma/beta are 0 there).
    x_p = x.astype(jnp.float32)
    if d < dp:
        x_p = jnp.zeros((n, dp), jnp.float32).at[:, :d].set(x_p)

    weight_bytes = n_layers * dp * dp * w.dtype.itemsize

    if weight_bytes <= fused_weight_bytes_limit:
        # Primary path: whole weight stack resident, layers unrolled in-kernel.
        out = pl.pallas_call(
            _generator_kernel_fused,
            out_shape=jax.ShapeDtypeStruct((n, dp), jnp.float32),
            in_specs=[
                pl.BlockSpec((n, dp), lambda: (0, 0)),
                pl.BlockSpec((n_layers, dp, dp), lambda: (0, 0, 0)),
                pl.BlockSpec((n_layers, 1, dp), lambda: (0, 0, 0)),
                pl.BlockSpec((n_layers, 1, dp), lambda: (0, 0, 0)),
            ],
            out_specs=pl.BlockSpec((n, dp), lambda: (0, 0)),
        )(x_p, w, gamma, beta)
    else:
        # Streamed fallback: grid over layers, per-layer weights triple-
        # buffered, activation resident in the output block.
        out = pl.pallas_call(
            _generator_kernel_streamed,
            out_shape=jax.ShapeDtypeStruct((n, dp), jnp.float32),
            grid_spec=pltpu.PrefetchScalarGridSpec(
                num_scalar_prefetch=0,
                grid=(n_layers,),
                in_specs=[
                    pl.BlockSpec((n, dp), lambda l: (0, 0)),
                    pl.BlockSpec((pl.Squeezed(), dp, dp),
                                 lambda l: (l, 0, 0),
                                 pipeline_mode=pl.Buffered(3)),
                    pl.BlockSpec((pl.Squeezed(), 1, dp), lambda l: (l, 0, 0)),
                    pl.BlockSpec((pl.Squeezed(), 1, dp), lambda l: (l, 0, 0)),
                ],
                out_specs=pl.BlockSpec((n, dp), lambda l: (0, 0)),
            ),
            compiler_params=pltpu.CompilerParams(
                dimension_semantics=("arbitrary",)),
        )(x_p, w, gamma, beta)

    return out[:, :d]


def init_generator_params(key, random_dim, hidden_dim):
    """Deterministic init mirroring the PyTorch module's parameter shapes,
    stacked over layers and zero-padded to the lane-dense feature width.
    The Linear bias is intentionally omitted (dead under training-mode BN)."""
    dim = random_dim
    for h in hidden_dim:
        assert h == dim
    n_layers = len(hidden_dim)
    dp = _pad_dim(dim)

    bound = 1.0 / (dim ** 0.5)  # PyTorch Linear default init bound
    w_list, g_list, b_list = [], [], []
    for _ in range(n_layers):
        key, kw = jax.random.split(key)
        # Pre-transposed (in_features, out_features), zero-padded to (Dp, Dp).
        w = jax.random.uniform(kw, (dim, dim), jnp.float32, -bound, bound)
        w_p = jnp.zeros((dp, dp), jnp.float32).at[:dim, :dim].set(w)
        w_list.append(w_p.astype(jnp.bfloat16))
        # BN weight/bias: gamma=1, beta=0 on real features; 0 on padded lanes.
        g = jnp.zeros((1, dp), jnp.float32).at[:, :dim].set(1.0)
        b = jnp.zeros((1, dp), jnp.float32)
        g_list.append(g)
        b_list.append(b)

    return (jnp.stack(w_list, axis=0),     # (L, Dp, Dp) bf16
            jnp.stack(g_list, axis=0),     # (L, 1, Dp)  f32
            jnp.stack(b_list, axis=0))     # (L, 1, Dp)  f32


def generator_reference(x, params):
    """Pure-jnp mirror of the kernel arithmetic (bf16 matmul, f32 BN) used to
    sanity-check the Pallas kernel."""
    w, gamma, beta = params
    n_layers, dp, _ = w.shape
    n, d = x.shape
    h = jnp.zeros((n, dp), jnp.float32).at[:, :d].set(x.astype(jnp.float32))
    inv_n = 1.0 / n
    for i in range(n_layers):
        y = jnp.dot(h.astype(jnp.bfloat16), w[i],
                    preferred_element_type=jnp.float32)
        mean = jnp.sum(y, axis=0, keepdims=True) * inv_n
        c = y - mean
        var = jnp.sum(c * c, axis=0, keepdims=True) * inv_n
        z = jnp.maximum(c * (gamma[i] * lax.rsqrt(var + _BN_EPS)) + beta[i],
                        0.0)
        h = h + z if i + 1 < n_layers else z
    return h[:, :d]


if __name__ == "__main__":
    key = jax.random.PRNGKey(0)

    # Small shapes consistent with the module: Generator(random_dim=32,
    # hidden_dim=(32, 32, 32), bn_decay=0.01).  batch=16 keeps bf16 LHS
    # sublane packing (16 rows / vreg) full.
    batch, dim = 16, 32
    hidden_dim = (dim, dim, dim)

    key, pkey, xkey = jax.random.split(key, 3)
    params = init_generator_params(pkey, dim, hidden_dim)
    x = jax.random.normal(xkey, (batch, dim), dtype=jnp.float32)

    out = generator_forward(x, params)
    jax.block_until_ready(out)

    assert out.shape == (batch, dim)
    assert out.dtype == jnp.float32
    assert bool(jnp.all(jnp.isfinite(out)))

    ref = generator_reference(x, params)
    max_err = float(jnp.max(jnp.abs(out - ref)))
    assert bool(jnp.allclose(out, ref, rtol=1e-2, atol=1e-2)), max_err

    print("KERNEL_OK")
</pallas_src>

<mosaic_0001>
module attributes {stable_mosaic.version = 11 : i64} {
  func.func @_generator_kernel_fused(%arg0: memref<16x128xf32, #tpu.memory_space<vmem>>, %arg1: memref<3x128x128xbf16, #tpu.memory_space<vmem>>, %arg2: memref<3x1x128xf32, #tpu.memory_space<vmem>>, %arg3: memref<3x1x128xf32, #tpu.memory_space<vmem>>, %arg4: memref<16x128xf32, #tpu.memory_space<vmem>>) attributes {dimension_semantics = [], scalar_prefetch = 0 : i64, scratch_operands = 0 : i64, tpu.core_type = #tpu.core_type<tc>} {
    %c0 = arith.constant 0 : index
    %c0_0 = arith.constant 0 : index
    %0 = vector.load %arg0[%c0, %c0_0] : memref<16x128xf32, #tpu.memory_space<vmem>>, vector<16x128xf32>
    %c0_i32 = arith.constant 0 : i32
    %1 = arith.index_cast %c0_i32 : i32 to index
    %c0_1 = arith.constant 0 : index
    %c0_2 = arith.constant 0 : index
    %2 = vector.load %arg1[%1, %c0_1, %c0_2] : memref<3x128x128xbf16, #tpu.memory_space<vmem>>, vector<1x128x128xbf16>
    %3 = vector.shape_cast %2 : vector<1x128x128xbf16> to vector<128x128xbf16>
    %4 = arith.index_cast %c0_i32 : i32 to index
    %c0_3 = arith.constant 0 : index
    %c0_4 = arith.constant 0 : index
    %5 = vector.load %arg2[%4, %c0_3, %c0_4] : memref<3x1x128xf32, #tpu.memory_space<vmem>>, vector<1x1x128xf32>
    %6 = vector.shape_cast %5 : vector<1x1x128xf32> to vector<1x128xf32>
    %7 = arith.index_cast %c0_i32 : i32 to index
    %c0_5 = arith.constant 0 : index
    %c0_6 = arith.constant 0 : index
    %8 = vector.load %arg3[%7, %c0_5, %c0_6] : memref<3x1x128xf32, #tpu.memory_space<vmem>>, vector<1x1x128xf32>
    %9 = vector.shape_cast %8 : vector<1x1x128xf32> to vector<1x128xf32>
    %10 = arith.truncf %0 : vector<16x128xf32> to vector<16x128xbf16>
    %cst = arith.constant dense<0.000000e+00> : vector<16x128xf32>
    %11 = tpu.matmul %10, %3, %cst {dimension_numbers = #tpu.dot_dimension_numbers<[1], [0], [0], [1], [0, 0, 1, 1], [], []>} : vector<16x128xbf16>, vector<128x128xbf16>, vector<16x128xf32> -> vector<16x128xf32>
    %cst_7 = arith.constant dense<0.000000e+00> : vector<128xf32>
    %12 = vector.multi_reduction <add>, %11, %cst_7 [0] : vector<16x128xf32> to vector<128xf32>
    %13 = vector.shape_cast %12 : vector<128xf32> to vector<1x128xf32>
    %cst_8 = arith.constant 6.250000e-02 : f32
    %14 = vector.broadcast %cst_8 : f32 to vector<1x128xf32>
    %15 = arith.mulf %13, %14 : vector<1x128xf32>
    %16 = vector.broadcast %15 : vector<1x128xf32> to vector<16x128xf32>
    %17 = arith.subf %11, %16 : vector<16x128xf32>
    %18 = arith.mulf %17, %17 : vector<16x128xf32>
    %cst_9 = arith.constant dense<0.000000e+00> : vector<128xf32>
    %19 = vector.multi_reduction <add>, %18, %cst_9 [0] : vector<16x128xf32> to vector<128xf32>
    %20 = vector.shape_cast %19 : vector<128xf32> to vector<1x128xf32>
    %cst_10 = arith.constant 6.250000e-02 : f32
    %21 = vector.broadcast %cst_10 : f32 to vector<1x128xf32>
    %22 = arith.mulf %20, %21 : vector<1x128xf32>
    %cst_11 = arith.constant 9.99999974E-6 : f32
    %23 = vector.broadcast %cst_11 : f32 to vector<1x128xf32>
    %24 = arith.addf %22, %23 : vector<1x128xf32>
    %25 = math.rsqrt %24 : vector<1x128xf32>
    %26 = arith.mulf %6, %25 : vector<1x128xf32>
    %27 = vector.broadcast %26 : vector<1x128xf32> to vector<16x128xf32>
    %28 = arith.mulf %17, %27 : vector<16x128xf32>
    %29 = vector.broadcast %9 : vector<1x128xf32> to vector<16x128xf32>
    %30 = arith.addf %28, %29 : vector<16x128xf32>
    %cst_12 = arith.constant 0.000000e+00 : f32
    %31 = vector.broadcast %cst_12 : f32 to vector<16x128xf32>
    %32 = arith.maximumf %30, %31 : vector<16x128xf32>
    %33 = arith.addf %0, %32 : vector<16x128xf32>
    %c1_i32 = arith.constant 1 : i32
    %34 = arith.index_cast %c1_i32 : i32 to index
    %c0_13 = arith.constant 0 : index
    %c0_14 = arith.constant 0 : index
    %35 = vector.load %arg1[%34, %c0_13, %c0_14] : memref<3x128x128xbf16, #tpu.memory_space<vmem>>, vector<1x128x128xbf16>
    %36 = vector.shape_cast %35 : vector<1x128x128xbf16> to vector<128x128xbf16>
    %37 = arith.index_cast %c1_i32 : i32 to index
    %c0_15 = arith.constant 0 : index
    %c0_16 = arith.constant 0 : index
    %38 = vector.load %arg2[%37, %c0_15, %c0_16] : memref<3x1x128xf32, #tpu.memory_space<vmem>>, vector<1x1x128xf32>
    %39 = vector.shape_cast %38 : vector<1x1x128xf32> to vector<1x128xf32>
    %40 = arith.index_cast %c1_i32 : i32 to index
    %c0_17 = arith.constant 0 : index
    %c0_18 = arith.constant 0 : index
    %41 = vector.load %arg3[%40, %c0_17, %c0_18] : memref<3x1x128xf32, #tpu.memory_space<vmem>>, vector<1x1x128xf32>
    %42 = vector.shape_cast %41 : vector<1x1x128xf32> to vector<1x128xf32>
    %43 = arith.truncf %33 : vector<16x128xf32> to vector<16x128xbf16>
    %cst_19 = arith.constant dense<0.000000e+00> : vector<16x128xf32>
    %44 = tpu.matmul %43, %36, %cst_19 {dimension_numbers = #tpu.dot_dimension_numbers<[1], [0], [0], [1], [0, 0, 1, 1], [], []>} : vector<16x128xbf16>, vector<128x128xbf16>, vector<16x128xf32> -> vector<16x128xf32>
    %cst_20 = arith.constant dense<0.000000e+00> : vector<128xf32>
    %45 = vector.multi_reduction <add>, %44, %cst_20 [0] : vector<16x128xf32> to vector<128xf32>
    %46 = vector.shape_cast %45 : vector<128xf32> to vector<1x128xf32>
    %cst_21 = arith.constant 6.250000e-02 : f32
    %47 = vector.broadcast %cst_21 : f32 to vector<1x128xf32>
    %48 = arith.mulf %46, %47 : vector<1x128xf32>
    %49 = vector.broadcast %48 : vector<1x128xf32> to vector<16x128xf32>
    %50 = arith.subf %44, %49 : vector<16x128xf32>
    %51 = arith.mulf %50, %50 : vector<16x128xf32>
    %cst_22 = arith.constant dense<0.000000e+00> : vector<128xf32>
    %52 = vector.multi_reduction <add>, %51, %cst_22 [0] : vector<16x128xf32> to vector<128xf32>
    %53 = vector.shape_cast %52 : vector<128xf32> to vector<1x128xf32>
    %cst_23 = arith.constant 6.250000e-02 : f32
    %54 = vector.broadcast %cst_23 : f32 to vector<1x128xf32>
    %55 = arith.mulf %53, %54 : vector<1x128xf32>
    %cst_24 = arith.constant 9.99999974E-6 : f32
    %56 = vector.broadcast %cst_24 : f32 to vector<1x128xf32>
    %57 = arith.addf %55, %56 : vector<1x128xf32>
    %58 = math.rsqrt %57 : vector<1x128xf32>
    %59 = arith.mulf %39, %58 : vector<1x128xf32>
    %60 = vector.broadcast %59 : vector<1x128xf32> to vector<16x128xf32>
    %61 = arith.mulf %50, %60 : vector<16x128xf32>
    %62 = vector.broadcast %42 : vector<1x128xf32> to vector<16x128xf32>
    %63 = arith.addf %61, %62 : vector<16x128xf32>
    %cst_25 = arith.constant 0.000000e+00 : f32
    %64 = vector.broadcast %cst_25 : f32 to vector<16x128xf32>
    %65 = arith.maximumf %63, %64 : vector<16x128xf32>
    %66 = arith.addf %33, %65 : vector<16x128xf32>
    %c2_i32 = arith.constant 2 : i32
    %c2 = arith.constant 2 : index
    %c0_26 = arith.constant 0 : index
    %c0_27 = arith.constant 0 : index
    %67 = vector.load %arg1[%c2, %c0_26, %c0_27] : memref<3x128x128xbf16, #tpu.memory_space<vmem>>, vector<1x128x128xbf16>
    %68 = vector.shape_cast %67 : vector<1x128x128xbf16> to vector<128x128xbf16>
    %c2_28 = arith.constant 2 : index
    %c0_29 = arith.constant 0 : index
    %c0_30 = arith.constant 0 : index
    %69 = vector.load %arg2[%c2_28, %c0_29, %c0_30] : memref<3x1x128xf32, #tpu.memory_space<vmem>>, vector<1x1x128xf32>
    %70 = vector.shape_cast %69 : vector<1x1x128xf32> to vector<1x128xf32>
    %c2_31 = arith.constant 2 : index
    %c0_32 = arith.constant 0 : index
    %c0_33 = arith.constant 0 : index
    %71 = vector.load %arg3[%c2_31, %c0_32, %c0_33] : memref<3x1x128xf32, #tpu.memory_space<vmem>>, vector<1x1x128xf32>
    %72 = vector.shape_cast %71 : vector<1x1x128xf32> to vector<1x128xf32>
    %73 = arith.truncf %66 : vector<16x128xf32> to vector<16x128xbf16>
    %cst_34 = arith.constant dense<0.000000e+00> : vector<16x128xf32>
    %74 = tpu.matmul %73, %68, %cst_34 {dimension_numbers = #tpu.dot_dimension_numbers<[1], [0], [0], [1], [0, 0, 1, 1], [], []>} : vector<16x128xbf16>, vector<128x128xbf16>, vector<16x128xf32> -> vector<16x128xf32>
    %cst_35 = arith.constant dense<0.000000e+00> : vector<128xf32>
    %75 = vector.multi_reduction <add>, %74, %cst_35 [0] : vector<16x128xf32> to vector<128xf32>
    %76 = vector.shape_cast %75 : vector<128xf32> to vector<1x128xf32>
    %cst_36 = arith.constant 6.250000e-02 : f32
    %77 = vector.broadcast %cst_36 : f32 to vector<1x128xf32>
    %78 = arith.mulf %76, %77 : vector<1x128xf32>
    %79 = vector.broadcast %78 : vector<1x128xf32> to vector<16x128xf32>
    %80 = arith.subf %74, %79 : vector<16x128xf32>
    %81 = arith.mulf %80, %80 : vector<16x128xf32>
    %cst_37 = arith.constant dense<0.000000e+00> : vector<128xf32>
    %82 = vector.multi_reduction <add>, %81, %cst_37 [0] : vector<16x128xf32> to vector<128xf32>
    %83 = vector.shape_cast %82 : vector<128xf32> to vector<1x128xf32>
    %cst_38 = arith.constant 6.250000e-02 : f32
    %84 = vector.broadcast %cst_38 : f32 to vector<1x128xf32>
    %85 = arith.mulf %83, %84 : vector<1x128xf32>
    %cst_39 = arith.constant 9.99999974E-6 : f32
    %86 = vector.broadcast %cst_39 : f32 to vector<1x128xf32>
    %87 = arith.addf %85, %86 : vector<1x128xf32>
    %88 = math.rsqrt %87 : vector<1x128xf32>
    %89 = arith.mulf %70, %88 : vector<1x128xf32>
    %90 = vector.broadcast %89 : vector<1x128xf32> to vector<16x128xf32>
    %91 = arith.mulf %80, %90 : vector<16x128xf32>
    %92 = vector.broadcast %72 : vector<1x128xf32> to vector<16x128xf32>
    %93 = arith.addf %91, %92 : vector<16x128xf32>
    %cst_40 = arith.constant 0.000000e+00 : f32
    %94 = vector.broadcast %cst_40 : f32 to vector<16x128xf32>
    %95 = arith.maximumf %93, %94 : vector<16x128xf32>
    %c0_41 = arith.constant 0 : index
    %c0_42 = arith.constant 0 : index
    %96 = vector.load %arg4[%c0_41, %c0_42] : memref<16x128xf32, #tpu.memory_space<vmem>>, vector<16x128xf32>
    tpu.vector_store %arg4[%c0_41, %c0_42], %95 {strides = array<i32>} : memref<16x128xf32, #tpu.memory_space<vmem>>, vector<16x128xf32>,
    return
  }
}

</mosaic_0001>

<bundles_post_ra>
// kernel: tpu_custom_call.1
= control target key start
LH: loop header
LB: loop body
LE: loop exit
PB: predicated region body
PF: predicated region fallthrough
CT: control target
= control target key end

     0   :  { %9 = vsyncpa [#allocation3], 0  ;;  %s898_s0 = inlined_call_operand.hbm [shape: f32[16,128], index: 0, kind: input, shape index: {}]   ;;  %s899_s1 = inlined_call_operand.hbm [shape: bf16[3,128,128], index: 1, kind: input, shape index: {}]   ;;  %s900_s2 = inlined_call_operand.vmem [shape: f32[3,1,128], index: 2, kind: input, shape index: {}]   ;;  %s901_s3 = inlined_call_operand.hbm [shape: f32[3,1,128], index: 3, kind: input, shape index: {}]   ;;  %s902_s4 = inlined_call_operand.hbm [shape: f32[16,128], index: 4, kind: output, shape index: {}]  }
   0x1   :  { %10 = vsyncpa [#allocation6], 0 }
   0x2   :  { %11 = vsyncpa [#allocation4], 0  ;;  %s783_s15 = smov [#allocation5]  }
   0x3   :  { %s29_s16 = sshll.u32 %s783_s15, 4  ;;  %s30_s16 = int_to_ptr.vmem [resolvable:$true] %s29_s16 }
   0x4   :  { %s705_s17 = scalar_lea.vmem %s30_s16, 3072  ;;  %p710_p1 = scmp.lt.s32.totalorder %s30_s16, %s30_s16 }
   0x5   :  { %p706_p0 = scmp.ne.s32.totalorder %s30_s16, %s705_s17  ;;  %p711_p2 = scmp.lt.s32.totalorder %s705_s17, %s705_s17 }
   0x7   :  { %p712_p3 = por %p711_p2, %p710_p1 }
   0x9   :  { %p713_p4 = pnand %p712_p3, %p706_p0 }
   0xb   :  { %716 = shalt.err (!%p713_p4)
}
   0xc   :  { %s784_s18 = smov 64   ;;  %s785_s19 = smov 4  }
   0xd   :  { %35 = dma.hbm_to_vmem [thread:$0]  %s899_s1, 3072, %s30_s16, [#allocation6], %s784_s18, %s784_s18, %s785_s19  }
   0xe   :  { %s786_s22 = smov [#allocation2]  }
   0xf   :  { %s17_s23 = sshll.u32 %s786_s22, 4  ;;  %s18_s23 = int_to_ptr.vmem [resolvable:$true] %s17_s23 }
  0x10   :  { %s725_s24 = scalar_lea.vmem %s18_s23, 256  ;;  %p730_p6 = scmp.lt.s32.totalorder %s18_s23, %s18_s23 }
  0x11   :  { %p726_p5 = scmp.ne.s32.totalorder %s18_s23, %s725_s24  ;;  %p731_p7 = scmp.lt.s32.totalorder %s725_s24, %s725_s24 }
  0x13   :  { %p732_p8 = por %p731_p7, %p730_p6 }
  0x15   :  { %p733_p9 = pnand %p732_p8, %p726_p5 }
  0x17   :  { %736 = shalt.err (!%p733_p9)
}
  0x18   :  { %s787_s25 = smov 128   ;;  %s788_s26 = smov 8  }
  0x19   :  { %23 = dma.hbm_to_vmem [thread:$0]  %s898_s0, 256, %s18_s23, [#allocation3], %s787_s25, %s787_s25, %s788_s26  }
  0x1a   :  { %s789_s1 = smov [#allocation7]  }
  0x1b   :  { %s43_s29 = sshll.u32 %s789_s1, 4  ;;  %s44_s29 = int_to_ptr.vmem [resolvable:$true] %s43_s29 }
  0x1c   :  { %s745_s30 = scalar_lea.vmem %s44_s29, 48  ;;  %s749_s5 = scalar_lea.vmem %s44_s29, 64 }
  0x1d   :  { %p746_p10 = scmp.ne.s32.totalorder %s44_s29, %s745_s30  ;;  %p750_p11 = scmp.lt.s32.totalorder %s44_s29, %s44_s29 }
  0x1e   :  { %p751_p12 = scmp.lt.s32.totalorder %s749_s5, %s745_s30 }
  0x20   :  { %p752_p13 = por %p751_p12, %p750_p11 }
  0x22   :  { %p753_p0 = pnand %p752_p13, %p746_p10 }
  0x24   :  { %756 = shalt.err (!%p753_p0)
}
  0x25   :  { %s790_s6 = smov 16   ;;  %s791_s7 = smov 1  }
  0x26   :  { %49 = dma.hbm_to_vmem [thread:$0]  %s901_s3, 48, %s44_s29, [#allocation6], %s790_s6, %s790_s6, %s791_s7  }
  0x27   :  { %777 = dma.done.wait [#allocation3], 256  }
  0x28   :  { %778 = vsyncadd [#allocation3], 4294967040 }
  0x29   :  { %779 = dma.done.wait [#allocation6], 3120  }
  0x2a   :  { %780 = vsyncadd [#allocation6], 4294964176  ;;  %v792_v0 = vmov 0.0   ;;  %vm793_vm0 = vmmov 0   ;;  %v667_v1 = vld [vmem:[#allocation5 + $0x38] sm:$0xff]   ;;  %v668_v2 = vld [vmem:[#allocation5 + $0x30] sm:$0xff]   ;;  %v194_v45 = vlaneseq }
  0x2b   :  { %595 = vmatprep.subr.bf16.mxu0 %v792_v0  ;;  %611 = vmatprep.mubr.msk.bf16.mxu0 %vm793_vm0, %v792_v0  ;;  %v669_v3 = vld [vmem:[#allocation5 + $0x28] sm:$0xff]   ;;  %v670_v4 = vld [vmem:[#allocation5 + $0x20] sm:$0xff]   ;;  %v671_v5 = vld [vmem:[#allocation5 + $0x18] sm:$0xff]   ;;  %s794_s14 = smov [#allocation8]  }
  0x2c   :  { %615 = vmatprep.subr.bf16.mxu1 %v792_v0  ;;  %631 = vmatprep.mubr.msk.bf16.mxu1 %vm793_vm0, %v792_v0  ;;  %v672_v6 = vld [vmem:[#allocation5 + $0x10] sm:$0xff]   ;;  %v673_v7 = vld [vmem:[#allocation5 + $0x8] sm:$0xff]   ;;  %v674_v8 = vld [vmem:[#allocation5] sm:$0xff]   ;;  %v195_v46 = vshrl.u32 %v194_v45, 7  ;;  %s526_s15 = sshll.u32 %s794_s14, 4  ;;  %s527_s15 = int_to_ptr.vmem [resolvable:$true] %s526_s15 }
  0x2d   :  { %596 = vmatpush3.bf16.msra.mxu0 %v667_v1  ;;  %v844_v9 = vld [vmem:[#allocation2] sm:$0xff]  ;;  %v846_v10 = vld [vmem:[#allocation2 + $0x8] sm:$0xff]  ;;  %v677_v14 = vld [vmem:[#allocation5 + $0x68] sm:$0xff]   ;;  %s757_s16 = scalar_lea.vmem %s527_s15, 256  ;;  %p762_p2 = scmp.lt.s32.totalorder %s527_s15, %s527_s15 }
  0x2e   :  { %597 = vmatprep.subr.bf16.mxu0 %v792_v0  ;;  %v80_v11 = vpack.c.bf16 %v846_v10, %v844_v9  ;;  %v675_v12 = vld [vmem:[#allocation5 + $0x78] sm:$0xff]   ;;  %v676_v13 = vld [vmem:[#allocation5 + $0x70] sm:$0xff]   ;;  %v678_v15 = vld [vmem:[#allocation5 + $0x60] sm:$0xff]   ;;  %v864_v48 = vsub.s32 0, %v195_v46  ;;  %p758_p1 = scmp.ne.s32.totalorder %s527_s15, %s757_s16  ;;  %p763_p3 = scmp.lt.s32.totalorder %s757_s16, %s757_s16 }
  0x2f   :  { %616 = vmatpush3.bf16.msra.mxu1 %v675_v12  ;;  %v679_v16 = vld [vmem:[#allocation5 + $0x58] sm:$0xff]   ;;  %v680_v17 = vld [vmem:[#allocation5 + $0x50] sm:$0xff]   ;;  %v681_v18 = vld [vmem:[#allocation5 + $0x48] sm:$0xff]  }
  0x30   :  { %617 = vmatprep.subr.bf16.mxu1 %v792_v0  ;;  %v682_v19 = vld [vmem:[#allocation5 + $0x40] sm:$0xff]   ;;  %v78_v47 = vld [vmem:[%s900_s2] sm:$0x1]  ;;  %v683_v62 = vld [vmem:[#allocation5 + $0xb8] sm:$0xff]   ;;  %p764_p4 = por %p763_p3, %p762_p2 }
  0x31   :  { %598 = vmatpush3.bf16.msra.mxu0 %v668_v2  ;;  %v547_v52 = vld [vmem:[#allocation7] ss:$0 sm:$0xff]  ;;  %v684_v63 = vld [vmem:[#allocation5 + $0xb0] sm:$0xff]   ;;  %v685_v1 = vld [vmem:[#allocation5 + $0xa8] sm:$0xff]  }
  0x32   :  { %599 = vmatprep.subr.bf16.mxu0 %v792_v0  ;;  %v686_v2 = vld [vmem:[#allocation5 + $0xa0] sm:$0xff]   ;;  %p765_p5 = pnand %p764_p4, %p758_p1 }
  0x33   :  { %618 = vmatpush3.bf16.msra.mxu1 %v676_v13 }
  0x34   :  { %619 = vmatprep.subr.bf16.mxu1 %v792_v0 }
  0x35   :  { %600 = vmatpush3.bf16.msra.mxu0 %v669_v3  ;;  %v687_v3 = vld [vmem:[#allocation5 + $0x98] sm:$0xff]  }
  0x36   :  { %601 = vmatprep.subr.bf16.mxu0 %v792_v0 }
  0x37   :  { %620 = vmatpush3.bf16.msra.mxu1 %v677_v14 }
  0x38   :  { %621 = vmatprep.subr.bf16.mxu1 %v792_v0 }
  0x39   :  { %602 = vmatpush3.bf16.msra.mxu0 %v670_v4  ;;  %v688_v4 = vld [vmem:[#allocation5 + $0x90] sm:$0xff]  }
  0x3a   :  { %603 = vmatprep.subr.bf16.mxu0 %v792_v0 }
  0x3b   :  { %622 = vmatpush3.bf16.msra.mxu1 %v678_v15 }
  0x3c   :  { %623 = vmatprep.subr.bf16.mxu1 %v792_v0 }
  0x3d   :  { %604 = vmatpush3.bf16.msra.mxu0 %v671_v5  ;;  %v689_v5 = vld [vmem:[#allocation5 + $0x88] sm:$0xff]  }
  0x3e   :  { %605 = vmatprep.subr.bf16.mxu0 %v792_v0 }
  0x3f   :  { %624 = vmatpush3.bf16.msra.mxu1 %v679_v16 }
  0x40   :  { %625 = vmatprep.subr.bf16.mxu1 %v792_v0 }
  0x41   :  { %606 = vmatpush3.bf16.msra.mxu0 %v672_v6  ;;  %v690_v6 = vld [vmem:[#allocation5 + $0x80] sm:$0xff]  }
  0x42   :  { %607 = vmatprep.subr.bf16.mxu0 %v792_v0 }
  0x43   :  { %626 = vmatpush3.bf16.msra.mxu1 %v680_v17 }
  0x44   :  { %627 = vmatprep.subr.bf16.mxu1 %v792_v0 }
  0x45   :  { %608 = vmatpush3.bf16.msra.mxu0 %v673_v7 }
  0x46   :  { %609 = vmatprep.subr.bf16.mxu0 %v792_v0 }
  0x47   :  { %628 = vmatpush3.bf16.msra.mxu1 %v681_v18 }
  0x48   :  { %629 = vmatprep.subr.bf16.mxu1 %v792_v0 }
  0x49   :  { %610 = vmatpush3.bf16.msra.mxu0 %v674_v8 }
  0x4a   :  { %635 = vmatprep.subr.bf16.mxu0 %v792_v0 }
  0x4b   :  { %630 = vmatpush3.bf16.msra.mxu1 %v682_v19 }
  0x4c   :  { %612 = vmatmul.mubr.bf16.vlgmr.msra.gmra.mxu0 %v80_v11 }
  0x4d   :  { %651 = vmatprep.mubr.msk.bf16.mxu0 %vm793_vm0, %v792_v0  ;;  %636 = vmatpush3.bf16.msra.mxu0 %v683_v62 }
  0x4e   :  { %637 = vmatprep.subr.bf16.mxu0 %v792_v0 }
  0x51   :  { %638 = vmatpush3.bf16.msra.mxu0 %v684_v63 }
  0x52   :  { %639 = vmatprep.subr.bf16.mxu0 %v792_v0 }
  0x55   :  { %640 = vmatpush3.bf16.msra.mxu0 %v685_v1 }
  0x56   :  { %641 = vmatprep.subr.bf16.mxu0 %v792_v0 }
  0x59   :  { %642 = vmatpush3.bf16.msra.mxu0 %v686_v2 }
  0x5a   :  { %643 = vmatprep.subr.bf16.mxu0 %v792_v0 }
  0x5d   :  { %644 = vmatpush3.bf16.msra.mxu0 %v687_v3 }
  0x5e   :  { %645 = vmatprep.subr.bf16.mxu0 %v792_v0 }
  0x61   :  { %646 = vmatpush3.bf16.msra.mxu0 %v688_v4 }
  0x62   :  { %647 = vmatprep.subr.bf16.mxu0 %v792_v0 }
  0x65   :  { %648 = vmatpush3.bf16.msra.mxu0 %v689_v5 }
  0x66   :  { %649 = vmatprep.subr.bf16.mxu0 %v792_v0 }
  0x69   :  { %650 = vmatpush3.bf16.msra.mxu0 %v690_v6 }
 0x10c   :  { %v163_v20 = vpop.f32.mrf.mxu0 }
 0x10e   :  { %v613_v21 = vpop.f32.mrf.mxu0 }
 0x110   :  { %v166_v22 = vpop.f32.mrf.mxu0 }
 0x111   :  { %v170_v23 = vadd.f32 %v166_v22, %v163_v20 }
 0x112   :  { %v614_v24 = vpop.f32.mrf.mxu0 }
 0x113   :  { %v171_v25 = vrot.slane %v170_v23, 4 }
 0x115   :  { %v172_v26 = vadd.f32 %v171_v25, %v170_v23 }
 0x117   :  { %v173_v27 = vrot.slane %v172_v26, 2 }
 0x119   :  { %v174_v28 = vadd.f32 %v173_v27, %v172_v26 }
 0x11b   :  { %v175_v29 = vrot.slane %v174_v28, 1 }
 0x11d   :  { %v176_v30 = vadd.f32 %v175_v29, %v174_v28 }
 0x11f   :  { %v177_v31 = vmul.f32 0.0625, %v176_v30 }
 0x121   :  { %v178_v32 = vsub.f32 %v163_v20, %v177_v31  ;;  %v179_v33 = vsub.f32 %v166_v22, %v177_v31  ;;  %v548_v31 = vld [vmem:[%s900_s2 + $0x1] sm:$0x1] }
 0x123   :  { %v180_v34 = vmul.f32 %v178_v32, %v178_v32  ;;  %v181_v35 = vmul.f32 %v179_v33, %v179_v33 }
 0x125   :  { %v182_v36 = vadd.f32 %v181_v35, %v180_v34  ;;  %v557_v35 = vld [vmem:[#allocation7 + $0x1] ss:$0 sm:$0xff] }
 0x127   :  { %v183_v37 = vrot.slane %v182_v36, 4 }
 0x129   :  { %v184_v38 = vadd.f32 %v183_v37, %v182_v36 }
 0x12b   :  { %v185_v39 = vrot.slane %v184_v38, 2 }
 0x12d   :  { %v186_v40 = vadd.f32 %v185_v39, %v184_v38 }
 0x12f   :  { %v187_v41 = vrot.slane %v186_v40, 1 }
 0x131   :  { %v188_v42 = vadd.f32 %v187_v41, %v186_v40 }
 0x133   :  { %v189_v43 = vmul.f32 0.0625, %v188_v42 }
 0x135   :  { %v190_v44 = vadd.f32 1e-05, %v189_v43 }
 0x137   :  { %691 = vrsqrt.f32 %v190_v44 }
 0x144   :  { %v692_v49 = vpop.eup %691 }
 0x145   :  { %v192_v50 = vmul.f32 %v692_v49, %v78_v47 }
 0x147   :  { %v197_v51 = vrot.slane %v192_v50, %v864_v48 }
 0x149   :  { %v199_v53 = vmul.f32 %v197_v51, %v178_v32  ;;  %v200_v54 = vmul.f32 %v197_v51, %v179_v33 }
 0x14b   :  { %v207_v55 = vadd.f32 %v547_v52, %v199_v53  ;;  %v208_v56 = vadd.f32 %v547_v52, %v200_v54 }
 0x14d   :  { %v210_v57 = vmax.f32 %v208_v56, 0.0  ;;  %v209_v58 = vmax.f32 %v207_v55, 0.0 }
 0x14f   :  { %v868_v59 = vadd.f32 %v209_v58, %v844_v9  ;;  %v871_v60 = vadd.f32 %v210_v57, %v846_v10 }
 0x151   :  { %v234_v61 = vpack.c.bf16 %v871_v60, %v868_v59 }
 0x153   :  { %632 = vmatmul.mubr.bf16.vlgmr.msra.gmra.mxu1 %v234_v61 }
 0x213   :  { %v317_v7 = vpop.f32.mrf.mxu1 }
 0x215   :  { %v633_v8 = vpop.f32.mrf.mxu1 }
 0x216   :  { %v558_v8 = vld [vmem:[%s900_s2 + $0x2] sm:$0x1] }
 0x217   :  { %v320_v9 = vpop.f32.mrf.mxu1 }
 0x218   :  { %v324_v10 = vadd.f32 %v320_v9, %v317_v7 }
 0x219   :  { %v634_v11 = vpop.f32.mrf.mxu1 }
 0x21a   :  { %v325_v12 = vrot.slane %v324_v10, 4 }
 0x21c   :  { %v326_v13 = vadd.f32 %v325_v12, %v324_v10  ;;  %v567_v12 = vld [vmem:[#allocation7 + $0x2] ss:$0 sm:$0xff] }
 0x21e   :  { %v327_v14 = vrot.slane %v326_v13, 2 }
 0x220   :  { %v328_v15 = vadd.f32 %v327_v14, %v326_v13 }
 0x222   :  { %v329_v16 = vrot.slane %v328_v15, 1 }
 0x224   :  { %v330_v17 = vadd.f32 %v329_v16, %v328_v15 }
 0x226   :  { %v331_v18 = vmul.f32 0.0625, %v330_v17 }
 0x228   :  { %v332_v19 = vsub.f32 %v317_v7, %v331_v18  ;;  %v333_v20 = vsub.f32 %v320_v9, %v331_v18 }
 0x22a   :  { %v334_v21 = vmul.f32 %v332_v19, %v332_v19  ;;  %v335_v22 = vmul.f32 %v333_v20, %v333_v20 }
 0x22c   :  { %v336_v23 = vadd.f32 %v335_v22, %v334_v21 }
 0x22e   :  { %v337_v0 = vrot.slane %v336_v23, 4 }
 0x230   :  { %v338_v24 = vadd.f32 %v337_v0, %v336_v23 }
 0x232   :  { %v339_v25 = vrot.slane %v338_v24, 2 }
 0x234   :  { %v340_v26 = vadd.f32 %v339_v25, %v338_v24 }
 0x236   :  { %v341_v27 = vrot.slane %v340_v26, 1 }
 0x238   :  { %v342_v28 = vadd.f32 %v341_v27, %v340_v26 }
 0x23a   :  { %v343_v29 = vmul.f32 0.0625, %v342_v28 }
 0x23c   :  { %v344_v30 = vadd.f32 1e-05, %v343_v29 }
 0x23e   :  { %693 = vrsqrt.f32 %v344_v30 }
 0x24b   :  { %v694_v32 = vpop.eup %693 }
 0x24c   :  { %v346_v33 = vmul.f32 %v694_v32, %v548_v31 }
 0x24e   :  { %v351_v34 = vrot.slane %v346_v33, %v864_v48 }
 0x250   :  { %v353_v36 = vmul.f32 %v351_v34, %v332_v19  ;;  %v354_v37 = vmul.f32 %v351_v34, %v333_v20 }
 0x252   :  { %v361_v38 = vadd.f32 %v557_v35, %v353_v36  ;;  %v362_v39 = vadd.f32 %v557_v35, %v354_v37 }
 0x254   :  { %v363_v40 = vmax.f32 %v361_v38, 0.0  ;;  %v364_v41 = vmax.f32 %v362_v39, 0.0 }
 0x256   :  { %v366_v42 = vadd.f32 %v364_v41, %v871_v60  ;;  %v365_v43 = vadd.f32 %v363_v40, %v868_v59 }
 0x258   :  { %v388_v44 = vpack.c.bf16 %v366_v42, %v365_v43 }
 0x25a   :  { %652 = vmatmul.mubr.bf16.vlgmr.msra.gmra.mxu0 %v388_v44 }
 0x31a   :  { %v471_v45 = vpop.f32.mrf.mxu0 }
 0x31c   :  { %v653_v46 = vpop.f32.mrf.mxu0 }
 0x31e   :  { %v474_v47 = vpop.f32.mrf.mxu0 }
 0x31f   :  { %v478_v49 = vadd.f32 %v474_v47, %v471_v45 }
 0x320   :  { %v654_v50 = vpop.f32.mrf.mxu0 }
 0x321   :  { %v479_v51 = vrot.slane %v478_v49, 4 }
 0x323   :  { %v480_v52 = vadd.f32 %v479_v51, %v478_v49 }
 0x325   :  { %v481_v53 = vrot.slane %v480_v52, 2 }
 0x327   :  { %v482_v54 = vadd.f32 %v481_v53, %v480_v52 }
 0x329   :  { %v483_v55 = vrot.slane %v482_v54, 1 }
 0x32b   :  { %v484_v56 = vadd.f32 %v483_v55, %v482_v54 }
 0x32d   :  { %v485_v57 = vmul.f32 0.0625, %v484_v56 }
 0x32f   :  { %v486_v58 = vsub.f32 %v471_v45, %v485_v57  ;;  %v487_v61 = vsub.f32 %v474_v47, %v485_v57 }
 0x331   :  { %v488_v62 = vmul.f32 %v486_v58, %v486_v58  ;;  %v489_v60 = vmul.f32 %v487_v61, %v487_v61 }
 0x333   :  { %v490_v63 = vadd.f32 %v489_v60, %v488_v62 }
 0x335   :  { %v491_v59 = vrot.slane %v490_v63, 4 }
 0x337   :  { %v492_v1 = vadd.f32 %v491_v59, %v490_v63 }
 0x339   :  { %v493_v2 = vrot.slane %v492_v1, 2 }
 0x33b   :  { %v494_v3 = vadd.f32 %v493_v2, %v492_v1 }
 0x33d   :  { %v495_v4 = vrot.slane %v494_v3, 1 }
 0x33f   :  { %v496_v5 = vadd.f32 %v495_v4, %v494_v3 }
 0x341   :  { %v497_v6 = vmul.f32 0.0625, %v496_v5 }
 0x343   :  { %v498_v7 = vadd.f32 1e-05, %v497_v6 }
 0x345   :  { %695 = vrsqrt.f32 %v498_v7 }
 0x352   :  { %v696_v9 = vpop.eup %695 }
 0x353   :  { %v500_v10 = vmul.f32 %v696_v9, %v558_v8 }
 0x355   :  { %v505_v11 = vrot.slane %v500_v10, %v864_v48 }
 0x357   :  { %v507_v13 = vmul.f32 %v505_v11, %v486_v58  ;;  %v508_v14 = vmul.f32 %v505_v11, %v487_v61 }
 0x359   :  { %v516_v15 = vadd.f32 %v567_v12, %v508_v14  ;;  %v515_v16 = vadd.f32 %v567_v12, %v507_v13 }
 0x35b   :  { %v517_v17 = vmax.f32 %v515_v16, 0.0  ;;  %v518_v18 = vmax.f32 %v516_v15, 0.0 }
 0x35d   :  { %519 = vst [vmem:[#allocation8] sm:$0xff] %v517_v17  ;;  %520 = vst [vmem:[#allocation8 + $0x8] sm:$0xff] %v518_v18 }
 0x35e   :  { %768 = shalt.err (!%p765_p5)
}
 0x35f   :  { %532 = dma.vmem_to_hbm [thread:$0]  %s527_s15, 256, %s902_s4, [#allocation4], %s787_s25, %s787_s25, %s788_s26  }
 0x360   :  { %781 = dma.done.wait [#allocation4], 256  }
 0x361   :  { %782 = vsyncadd [#allocation4], 4294967040 }
 0x362   :  { %536 = vsyncpa [#allocation3], 1 }
 0x363   :  { %537 = vsyncpa [#allocation6], 1 }
 0x364   :  { %538 = vsyncpa [#allocation4], 1 }

</bundles_post_ra>
